<compile_context>
chip_gen: v7x
topology: tpu7x:2x2x1
jax: 0.10.0
libtpu: 0.0.40
codegen_flags: <defaults>
</compile_context>

<pallas_src>
import functools

import numpy as np
import jax
import jax.numpy as jnp
from jax import lax
from jax.experimental import pallas as pl
from jax.experimental.pallas import tpu as pltpu

_BN_EPS = 1e-5


# ----------------------------------------------------------------------------
# In-kernel layer: conv(3x3, s2, p1) + bias + ReLU + BatchNorm(training)
#   src    : (N*Hin, Win*Cin) activation slab (value)
#   l_ref  : (3, N*Ho, N*Hin)    row-tap selectors (one per kh)
#   rw_ref : (3, Win*Cin, Wo*Co) W-tap selectors fused with conv weights
#   pk_ref : (3, Wo*Co)          rows = [bias, gamma, beta] tiled over w lane-blocks
#   ms_ref : (Wo*Co, Wo*Co)      same-channel reduce/broadcast matrix for BN stats
# ----------------------------------------------------------------------------
def _layer(src, l_ref, rw_ref, pk_ref, ms_ref, count):
    # conv: accumulate the three row-tap matmuls (all MXU work, no strided/gather ops)
    acc = None
    for kh in range(3):
        t = jnp.dot(l_ref[kh], src, preferred_element_type=jnp.float32)
        t = jnp.dot(t, rw_ref[kh], preferred_element_type=jnp.float32)
        acc = t if acc is None else acc + t

    y = jnp.maximum(acc + pk_ref[0:1, :], 0.0)               # bias + ReLU (before BN, as in module)

    # BatchNorm, one-pass stats: sum & sum-of-squares, var = E[y^2] - mean^2
    inv_cnt = 1.0 / float(count)
    col_s = jnp.sum(y, axis=0, keepdims=True)                # (1, Wo*Co)
    col_q = jnp.sum(y * y, axis=0, keepdims=True)
    mean = jnp.dot(col_s, ms_ref[...], preferred_element_type=jnp.float32) * inv_cnt
    ex2 = jnp.dot(col_q, ms_ref[...], preferred_element_type=jnp.float32) * inv_cnt
    var = ex2 - mean * mean                                  # biased batch variance
    y = (y - mean) * lax.rsqrt(var + _BN_EPS)
    return y * pk_ref[1:2, :] + pk_ref[2:3, :]               # gamma, beta


def _fused_kernel(counts, x_ref,
                  l1, rw1, pk1, ms1,
                  l2, rw2, pk2, ms2,
                  l3, rw3, pk3, ms3,
                  o_ref):
    y = _layer(x_ref[...], l1, rw1, pk1, ms1, counts[0])     # layer 1 (VMEM resident)
    y = _layer(y, l2, rw2, pk2, ms2, counts[1])              # layer 2 (never touches HBM)
    o_ref[...] = _layer(y, l3, rw3, pk3, ms3, counts[2])     # layer 3 -> output


# ----------------------------------------------------------------------------
# Wrapper-side constant construction (trace-time numpy + tiny einsum on weights)
# ----------------------------------------------------------------------------
def _layer_constants(w_oihw, bias, gamma, beta, n, hin, win):
    cout, cin = int(w_oihw.shape[0]), int(w_oihw.shape[1])
    ho = (hin - 1) // 2 + 1
    wo = (win - 1) // 2 + 1

    # L[kh, b*ho+i, b*hin+r] = 1  iff  r == 2*i + kh - 1 is a valid input row
    # (invalid rows are the zero padding -> the whole row stays 0)
    l_mat = np.zeros((3, n * ho, n * hin), np.float32)
    for kh in range(3):
        for b in range(n):
            for i in range(ho):
                r = 2 * i + kh - 1
                if 0 <= r < hin:
                    l_mat[kh, b * ho + i, b * hin + r] = 1.0

    # Sel[kw, q, j] = 1  iff  q == 2*j + kw - 1 is a valid input column
    sel = np.zeros((3, win, wo), np.float32)
    for kw in range(3):
        for j in range(wo):
            q = 2 * j + kw - 1
            if 0 <= q < win:
                sel[kw, q, j] = 1.0

    # RW[kh, q*cin+c, j*cout+o] = sum_kw Sel[kw,q,j] * W[o,c,kh,kw]
    wt = jnp.transpose(w_oihw.astype(jnp.float32), (2, 3, 1, 0))       # (kh, kw, cin, cout)
    rw = jnp.einsum("kqj,hkio->hqijo", jnp.asarray(sel), wt)
    rw = rw.reshape(3, win * cin, wo * cout)

    # Same-channel reduce+broadcast matrix over the (w, c) lane layout
    ms = np.tile(np.eye(cout, dtype=np.float32), (wo, wo))

    # Packed per-lane bias / gamma / beta (rows 0/1/2)
    pk = jnp.stack([jnp.tile(bias.astype(jnp.float32), wo),
                    jnp.tile(gamma.astype(jnp.float32), wo),
                    jnp.tile(beta.astype(jnp.float32), wo)], axis=0)

    return (jnp.asarray(l_mat), rw, pk, jnp.asarray(ms)), (ho, wo)


# ----------------------------------------------------------------------------
# Full ConvInputModel forward (NCHW in / NCHW out, like PyTorch)
# ----------------------------------------------------------------------------
def conv_input_model(img_nchw, params):
    n, cin, h, w = map(int, img_nchw.shape)
    f = int(params["l1"][0].shape[0])

    consts, counts = [], []
    hin, win = h, w
    for name in ("l1", "l2", "l3"):
        wgt, b, g, be = params[name]
        (lm, rw, pk, ms), (ho, wo) = _layer_constants(wgt, b, g, be, n, hin, win)
        consts += [lm, rw, pk, ms]
        counts.append(n * ho * wo)                 # BN element count per channel
        hin, win = ho, wo
    ho3, wo3 = hin, win

    # raw input NCHW -> (rows = (n, h), lanes = (w, c)) slab; the only HBM tensor operand
    x2d = jnp.transpose(img_nchw, (0, 2, 3, 1)).astype(jnp.float32).reshape(n * h, w * cin)

    vmem = pl.BlockSpec(memory_space=pltpu.MemorySpace.VMEM)
    out2d = pl.pallas_call(
        functools.partial(_fused_kernel, tuple(counts)),
        out_shape=jax.ShapeDtypeStruct((n * ho3, wo3 * f), jnp.float32),
        in_specs=[vmem] * (1 + len(consts)),
        out_specs=vmem,
    )(x2d, *consts)

    out = out2d.reshape(n, ho3, wo3, f)
    return jnp.transpose(out, (0, 3, 1, 2))        # NHWC -> NCHW


def init_params(key, filter_size):
    """Deterministic synthetic parameters matching the module's __init__ shapes."""
    ks = jax.random.split(key, 6)

    def conv_w(k, cout, cin):
        fan_in = cin * 9
        return jax.random.normal(k, (cout, cin, 3, 3), jnp.float32) / jnp.sqrt(fan_in)

    def conv_b(k, cout):
        return 0.1 * jax.random.normal(k, (cout,), jnp.float32)

    fs = filter_size
    return {
        "l1": (conv_w(ks[0], fs, 3), conv_b(ks[1], fs),
               jnp.ones((fs,), jnp.float32), jnp.zeros((fs,), jnp.float32)),
        "l2": (conv_w(ks[2], fs, fs), conv_b(ks[3], fs),
               jnp.ones((fs,), jnp.float32), jnp.zeros((fs,), jnp.float32)),
        "l3": (conv_w(ks[4], fs, fs), conv_b(ks[5], fs),
               jnp.ones((fs,), jnp.float32), jnp.zeros((fs,), jnp.float32)),
    }


# ----------------------------------------------------------------------------
# Pure-JAX reference (sanity check only)
# ----------------------------------------------------------------------------
def _reference(img_nchw, params):
    x = jnp.transpose(img_nchw, (0, 2, 3, 1))
    for layer in ("l1", "l2", "l3"):
        w, b, g, be = params[layer]
        w_hwio = jnp.transpose(w, (2, 3, 1, 0))
        x = lax.conv_general_dilated(
            x, w_hwio, window_strides=(2, 2), padding=((1, 1), (1, 1)),
            dimension_numbers=("NHWC", "HWIO", "NHWC"))
        x = x + b.reshape(1, 1, 1, -1)
        x = jnp.maximum(x, 0.0)
        mean = jnp.mean(x, axis=(0, 1, 2), keepdims=True)
        var = jnp.mean(jnp.square(x - mean), axis=(0, 1, 2), keepdims=True)
        x = (x - mean) * lax.rsqrt(var + _BN_EPS)
        x = x * g.reshape(1, 1, 1, -1) + be.reshape(1, 1, 1, -1)
    return jnp.transpose(x, (0, 3, 1, 2))


if __name__ == "__main__":
    key = jax.random.PRNGKey(0)
    k_img, k_par = jax.random.split(key)

    filter_size = 8
    img = jax.random.normal(k_img, (2, 3, 16, 16), jnp.float32)   # NCHW, 3 input channels
    params = init_params(k_par, filter_size)

    out = jax.block_until_ready(jax.jit(conv_input_model)(img, params))
    assert out.shape == (2, filter_size, 2, 2), out.shape         # 16 -> 8 -> 4 -> 2 spatial

    ref = jax.block_until_ready(_reference(img, params))
    assert jnp.allclose(out, ref, rtol=1e-3, atol=1e-3), float(jnp.max(jnp.abs(out - ref)))

    print("KERNEL_OK")
</pallas_src>

<mosaic_0001>
module attributes {stable_mosaic.version = 11 : i64} {
  func.func @_fused_kernel(%arg0: memref<32x48xf32, #tpu.memory_space<vmem>>, %arg1: memref<3x16x32xf32, #tpu.memory_space<vmem>>, %arg2: memref<3x48x64xf32, #tpu.memory_space<vmem>>, %arg3: memref<3x64xf32, #tpu.memory_space<vmem>>, %arg4: memref<64x64xf32, #tpu.memory_space<vmem>>, %arg5: memref<3x8x16xf32, #tpu.memory_space<vmem>>, %arg6: memref<3x64x32xf32, #tpu.memory_space<vmem>>, %arg7: memref<3x32xf32, #tpu.memory_space<vmem>>, %arg8: memref<32x32xf32, #tpu.memory_space<vmem>>, %arg9: memref<3x4x8xf32, #tpu.memory_space<vmem>>, %arg10: memref<3x32x16xf32, #tpu.memory_space<vmem>>, %arg11: memref<3x16xf32, #tpu.memory_space<vmem>>, %arg12: memref<16x16xf32, #tpu.memory_space<vmem>>, %arg13: memref<4x16xf32, #tpu.memory_space<vmem>>) attributes {dimension_semantics = [], scalar_prefetch = 0 : i64, scratch_operands = 0 : i64, tpu.core_type = #tpu.core_type<tc>} {
    %c0 = arith.constant 0 : index
    %c0_0 = arith.constant 0 : index
    %0 = vector.load %arg0[%c0, %c0_0] : memref<32x48xf32, #tpu.memory_space<vmem>>, vector<32x48xf32>
    %c0_1 = arith.constant 0 : index
    %c0_2 = arith.constant 0 : index
    %c0_3 = arith.constant 0 : index
    %1 = vector.load %arg1[%c0_1, %c0_2, %c0_3] : memref<3x16x32xf32, #tpu.memory_space<vmem>>, vector<1x16x32xf32>
    %2 = vector.shape_cast %1 : vector<1x16x32xf32> to vector<16x32xf32>
    %cst = arith.constant dense<0.000000e+00> : vector<16x48xf32>
    %3 = tpu.matmul %2, %0, %cst {dimension_numbers = #tpu.dot_dimension_numbers<[1], [0], [0], [1], [0, 0, 1, 1], [], []>} : vector<16x32xf32>, vector<32x48xf32>, vector<16x48xf32> -> vector<16x48xf32>
    %c0_4 = arith.constant 0 : index
    %c0_5 = arith.constant 0 : index
    %c0_6 = arith.constant 0 : index
    %4 = vector.load %arg2[%c0_4, %c0_5, %c0_6] : memref<3x48x64xf32, #tpu.memory_space<vmem>>, vector<1x48x64xf32>
    %5 = vector.shape_cast %4 : vector<1x48x64xf32> to vector<48x64xf32>
    %cst_7 = arith.constant dense<0.000000e+00> : vector<16x64xf32>
    %6 = tpu.matmul %3, %5, %cst_7 {dimension_numbers = #tpu.dot_dimension_numbers<[1], [0], [0], [1], [0, 0, 1, 1], [], []>} : vector<16x48xf32>, vector<48x64xf32>, vector<16x64xf32> -> vector<16x64xf32>
    %c1 = arith.constant 1 : index
    %c0_8 = arith.constant 0 : index
    %c0_9 = arith.constant 0 : index
    %7 = vector.load %arg1[%c1, %c0_8, %c0_9] : memref<3x16x32xf32, #tpu.memory_space<vmem>>, vector<1x16x32xf32>
    %8 = vector.shape_cast %7 : vector<1x16x32xf32> to vector<16x32xf32>
    %cst_10 = arith.constant dense<0.000000e+00> : vector<16x48xf32>
    %9 = tpu.matmul %8, %0, %cst_10 {dimension_numbers = #tpu.dot_dimension_numbers<[1], [0], [0], [1], [0, 0, 1, 1], [], []>} : vector<16x32xf32>, vector<32x48xf32>, vector<16x48xf32> -> vector<16x48xf32>
    %c1_11 = arith.constant 1 : index
    %c0_12 = arith.constant 0 : index
    %c0_13 = arith.constant 0 : index
    %10 = vector.load %arg2[%c1_11, %c0_12, %c0_13] : memref<3x48x64xf32, #tpu.memory_space<vmem>>, vector<1x48x64xf32>
    %11 = vector.shape_cast %10 : vector<1x48x64xf32> to vector<48x64xf32>
    %cst_14 = arith.constant dense<0.000000e+00> : vector<16x64xf32>
    %12 = tpu.matmul %9, %11, %cst_14 {dimension_numbers = #tpu.dot_dimension_numbers<[1], [0], [0], [1], [0, 0, 1, 1], [], []>} : vector<16x48xf32>, vector<48x64xf32>, vector<16x64xf32> -> vector<16x64xf32>
    %13 = arith.addf %6, %12 : vector<16x64xf32>
    %c2 = arith.constant 2 : index
    %c0_15 = arith.constant 0 : index
    %c0_16 = arith.constant 0 : index
    %14 = vector.load %arg1[%c2, %c0_15, %c0_16] : memref<3x16x32xf32, #tpu.memory_space<vmem>>, vector<1x16x32xf32>
    %15 = vector.shape_cast %14 : vector<1x16x32xf32> to vector<16x32xf32>
    %cst_17 = arith.constant dense<0.000000e+00> : vector<16x48xf32>
    %16 = tpu.matmul %15, %0, %cst_17 {dimension_numbers = #tpu.dot_dimension_numbers<[1], [0], [0], [1], [0, 0, 1, 1], [], []>} : vector<16x32xf32>, vector<32x48xf32>, vector<16x48xf32> -> vector<16x48xf32>
    %c2_18 = arith.constant 2 : index
    %c0_19 = arith.constant 0 : index
    %c0_20 = arith.constant 0 : index
    %17 = vector.load %arg2[%c2_18, %c0_19, %c0_20] : memref<3x48x64xf32, #tpu.memory_space<vmem>>, vector<1x48x64xf32>
    %18 = vector.shape_cast %17 : vector<1x48x64xf32> to vector<48x64xf32>
    %cst_21 = arith.constant dense<0.000000e+00> : vector<16x64xf32>
    %19 = tpu.matmul %16, %18, %cst_21 {dimension_numbers = #tpu.dot_dimension_numbers<[1], [0], [0], [1], [0, 0, 1, 1], [], []>} : vector<16x48xf32>, vector<48x64xf32>, vector<16x64xf32> -> vector<16x64xf32>
    %20 = arith.addf %13, %19 : vector<16x64xf32>
    %c0_22 = arith.constant 0 : index
    %c0_23 = arith.constant 0 : index
    %21 = vector.load %arg3[%c0_22, %c0_23] : memref<3x64xf32, #tpu.memory_space<vmem>>, vector<1x64xf32>
    %22 = vector.broadcast %21 : vector<1x64xf32> to vector<16x64xf32>
    %23 = arith.addf %20, %22 : vector<16x64xf32>
    %cst_24 = arith.constant 0.000000e+00 : f32
    %24 = vector.broadcast %cst_24 : f32 to vector<16x64xf32>
    %25 = arith.maximumf %23, %24 : vector<16x64xf32>
    %cst_25 = arith.constant dense<0.000000e+00> : vector<64xf32>
    %26 = vector.multi_reduction <add>, %25, %cst_25 [0] : vector<16x64xf32> to vector<64xf32>
    %27 = vector.shape_cast %26 : vector<64xf32> to vector<1x64xf32>
    %28 = arith.mulf %25, %25 : vector<16x64xf32>
    %cst_26 = arith.constant dense<0.000000e+00> : vector<64xf32>
    %29 = vector.multi_reduction <add>, %28, %cst_26 [0] : vector<16x64xf32> to vector<64xf32>
    %30 = vector.shape_cast %29 : vector<64xf32> to vector<1x64xf32>
    %c0_27 = arith.constant 0 : index
    %c0_28 = arith.constant 0 : index
    %31 = vector.load %arg4[%c0_27, %c0_28] : memref<64x64xf32, #tpu.memory_space<vmem>>, vector<64x64xf32>
    %cst_29 = arith.constant dense<0.000000e+00> : vector<1x64xf32>
    %32 = tpu.matmul %27, %31, %cst_29 {dimension_numbers = #tpu.dot_dimension_numbers<[1], [0], [0], [1], [0, 0, 1, 1], [], []>} : vector<1x64xf32>, vector<64x64xf32>, vector<1x64xf32> -> vector<1x64xf32>
    %cst_30 = arith.constant 7.812500e-03 : f32
    %33 = vector.broadcast %cst_30 : f32 to vector<1x64xf32>
    %34 = arith.mulf %32, %33 : vector<1x64xf32>
    %c0_31 = arith.constant 0 : index
    %c0_32 = arith.constant 0 : index
    %35 = vector.load %arg4[%c0_31, %c0_32] : memref<64x64xf32, #tpu.memory_space<vmem>>, vector<64x64xf32>
    %cst_33 = arith.constant dense<0.000000e+00> : vector<1x64xf32>
    %36 = tpu.matmul %30, %35, %cst_33 {dimension_numbers = #tpu.dot_dimension_numbers<[1], [0], [0], [1], [0, 0, 1, 1], [], []>} : vector<1x64xf32>, vector<64x64xf32>, vector<1x64xf32> -> vector<1x64xf32>
    %cst_34 = arith.constant 7.812500e-03 : f32
    %37 = vector.broadcast %cst_34 : f32 to vector<1x64xf32>
    %38 = arith.mulf %36, %37 : vector<1x64xf32>
    %39 = arith.mulf %34, %34 : vector<1x64xf32>
    %40 = arith.subf %38, %39 : vector<1x64xf32>
    %41 = vector.broadcast %34 : vector<1x64xf32> to vector<16x64xf32>
    %42 = arith.subf %25, %41 : vector<16x64xf32>
    %cst_35 = arith.constant 9.99999974E-6 : f32
    %43 = vector.broadcast %cst_35 : f32 to vector<1x64xf32>
    %44 = arith.addf %40, %43 : vector<1x64xf32>
    %45 = math.rsqrt %44 : vector<1x64xf32>
    %46 = vector.broadcast %45 : vector<1x64xf32> to vector<16x64xf32>
    %47 = arith.mulf %42, %46 : vector<16x64xf32>
    %c1_36 = arith.constant 1 : index
    %c0_37 = arith.constant 0 : index
    %48 = vector.load %arg3[%c1_36, %c0_37] : memref<3x64xf32, #tpu.memory_space<vmem>>, vector<1x64xf32>
    %49 = vector.broadcast %48 : vector<1x64xf32> to vector<16x64xf32>
    %50 = arith.mulf %47, %49 : vector<16x64xf32>
    %c2_38 = arith.constant 2 : index
    %c0_39 = arith.constant 0 : index
    %51 = vector.load %arg3[%c2_38, %c0_39] : memref<3x64xf32, #tpu.memory_space<vmem>>, vector<1x64xf32>
    %52 = vector.broadcast %51 : vector<1x64xf32> to vector<16x64xf32>
    %53 = arith.addf %50, %52 : vector<16x64xf32>
    %c0_40 = arith.constant 0 : index
    %c0_41 = arith.constant 0 : index
    %c0_42 = arith.constant 0 : index
    %54 = vector.load %arg5[%c0_40, %c0_41, %c0_42] : memref<3x8x16xf32, #tpu.memory_space<vmem>>, vector<1x8x16xf32>
    %55 = vector.shape_cast %54 : vector<1x8x16xf32> to vector<8x16xf32>
    %cst_43 = arith.constant dense<0.000000e+00> : vector<8x64xf32>
    %56 = tpu.matmul %55, %53, %cst_43 {dimension_numbers = #tpu.dot_dimension_numbers<[1], [0], [0], [1], [0, 0, 1, 1], [], []>} : vector<8x16xf32>, vector<16x64xf32>, vector<8x64xf32> -> vector<8x64xf32>
    %c0_44 = arith.constant 0 : index
    %c0_45 = arith.constant 0 : index
    %c0_46 = arith.constant 0 : index
    %57 = vector.load %arg6[%c0_44, %c0_45, %c0_46] : memref<3x64x32xf32, #tpu.memory_space<vmem>>, vector<1x64x32xf32>
    %58 = vector.shape_cast %57 : vector<1x64x32xf32> to vector<64x32xf32>
    %cst_47 = arith.constant dense<0.000000e+00> : vector<8x32xf32>
    %59 = tpu.matmul %56, %58, %cst_47 {dimension_numbers = #tpu.dot_dimension_numbers<[1], [0], [0], [1], [0, 0, 1, 1], [], []>} : vector<8x64xf32>, vector<64x32xf32>, vector<8x32xf32> -> vector<8x32xf32>
    %c1_48 = arith.constant 1 : index
    %c0_49 = arith.constant 0 : index
    %c0_50 = arith.constant 0 : index
    %60 = vector.load %arg5[%c1_48, %c0_49, %c0_50] : memref<3x8x16xf32, #tpu.memory_space<vmem>>, vector<1x8x16xf32>
    %61 = vector.shape_cast %60 : vector<1x8x16xf32> to vector<8x16xf32>
    %cst_51 = arith.constant dense<0.000000e+00> : vector<8x64xf32>
    %62 = tpu.matmul %61, %53, %cst_51 {dimension_numbers = #tpu.dot_dimension_numbers<[1], [0], [0], [1], [0, 0, 1, 1], [], []>} : vector<8x16xf32>, vector<16x64xf32>, vector<8x64xf32> -> vector<8x64xf32>
    %c1_52 = arith.constant 1 : index
    %c0_53 = arith.constant 0 : index
    %c0_54 = arith.constant 0 : index
    %63 = vector.load %arg6[%c1_52, %c0_53, %c0_54] : memref<3x64x32xf32, #tpu.memory_space<vmem>>, vector<1x64x32xf32>
    %64 = vector.shape_cast %63 : vector<1x64x32xf32> to vector<64x32xf32>
    %cst_55 = arith.constant dense<0.000000e+00> : vector<8x32xf32>
    %65 = tpu.matmul %62, %64, %cst_55 {dimension_numbers = #tpu.dot_dimension_numbers<[1], [0], [0], [1], [0, 0, 1, 1], [], []>} : vector<8x64xf32>, vector<64x32xf32>, vector<8x32xf32> -> vector<8x32xf32>
    %66 = arith.addf %59, %65 : vector<8x32xf32>
    %c2_56 = arith.constant 2 : index
    %c0_57 = arith.constant 0 : index
    %c0_58 = arith.constant 0 : index
    %67 = vector.load %arg5[%c2_56, %c0_57, %c0_58] : memref<3x8x16xf32, #tpu.memory_space<vmem>>, vector<1x8x16xf32>
    %68 = vector.shape_cast %67 : vector<1x8x16xf32> to vector<8x16xf32>
    %cst_59 = arith.constant dense<0.000000e+00> : vector<8x64xf32>
    %69 = tpu.matmul %68, %53, %cst_59 {dimension_numbers = #tpu.dot_dimension_numbers<[1], [0], [0], [1], [0, 0, 1, 1], [], []>} : vector<8x16xf32>, vector<16x64xf32>, vector<8x64xf32> -> vector<8x64xf32>
    %c2_60 = arith.constant 2 : index
    %c0_61 = arith.constant 0 : index
    %c0_62 = arith.constant 0 : index
    %70 = vector.load %arg6[%c2_60, %c0_61, %c0_62] : memref<3x64x32xf32, #tpu.memory_space<vmem>>, vector<1x64x32xf32>
    %71 = vector.shape_cast %70 : vector<1x64x32xf32> to vector<64x32xf32>
    %cst_63 = arith.constant dense<0.000000e+00> : vector<8x32xf32>
    %72 = tpu.matmul %69, %71, %cst_63 {dimension_numbers = #tpu.dot_dimension_numbers<[1], [0], [0], [1], [0, 0, 1, 1], [], []>} : vector<8x64xf32>, vector<64x32xf32>, vector<8x32xf32> -> vector<8x32xf32>
    %73 = arith.addf %66, %72 : vector<8x32xf32>
    %c0_64 = arith.constant 0 : index
    %c0_65 = arith.constant 0 : index
    %74 = vector.load %arg7[%c0_64, %c0_65] : memref<3x32xf32, #tpu.memory_space<vmem>>, vector<1x32xf32>
    %75 = vector.broadcast %74 : vector<1x32xf32> to vector<8x32xf32>
    %76 = arith.addf %73, %75 : vector<8x32xf32>
    %cst_66 = arith.constant 0.000000e+00 : f32
    %77 = vector.broadcast %cst_66 : f32 to vector<8x32xf32>
    %78 = arith.maximumf %76, %77 : vector<8x32xf32>
    %cst_67 = arith.constant dense<0.000000e+00> : vector<32xf32>
    %79 = vector.multi_reduction <add>, %78, %cst_67 [0] : vector<8x32xf32> to vector<32xf32>
    %80 = vector.shape_cast %79 : vector<32xf32> to vector<1x32xf32>
    %81 = arith.mulf %78, %78 : vector<8x32xf32>
    %cst_68 = arith.constant dense<0.000000e+00> : vector<32xf32>
    %82 = vector.multi_reduction <add>, %81, %cst_68 [0] : vector<8x32xf32> to vector<32xf32>
    %83 = vector.shape_cast %82 : vector<32xf32> to vector<1x32xf32>
    %c0_69 = arith.constant 0 : index
    %c0_70 = arith.constant 0 : index
    %84 = vector.load %arg8[%c0_69, %c0_70] : memref<32x32xf32, #tpu.memory_space<vmem>>, vector<32x32xf32>
    %cst_71 = arith.constant dense<0.000000e+00> : vector<1x32xf32>
    %85 = tpu.matmul %80, %84, %cst_71 {dimension_numbers = #tpu.dot_dimension_numbers<[1], [0], [0], [1], [0, 0, 1, 1], [], []>} : vector<1x32xf32>, vector<32x32xf32>, vector<1x32xf32> -> vector<1x32xf32>
    %cst_72 = arith.constant 3.125000e-02 : f32
    %86 = vector.broadcast %cst_72 : f32 to vector<1x32xf32>
    %87 = arith.mulf %85, %86 : vector<1x32xf32>
    %c0_73 = arith.constant 0 : index
    %c0_74 = arith.constant 0 : index
    %88 = vector.load %arg8[%c0_73, %c0_74] : memref<32x32xf32, #tpu.memory_space<vmem>>, vector<32x32xf32>
    %cst_75 = arith.constant dense<0.000000e+00> : vector<1x32xf32>
    %89 = tpu.matmul %83, %88, %cst_75 {dimension_numbers = #tpu.dot_dimension_numbers<[1], [0], [0], [1], [0, 0, 1, 1], [], []>} : vector<1x32xf32>, vector<32x32xf32>, vector<1x32xf32> -> vector<1x32xf32>
    %cst_76 = arith.constant 3.125000e-02 : f32
    %90 = vector.broadcast %cst_76 : f32 to vector<1x32xf32>
    %91 = arith.mulf %89, %90 : vector<1x32xf32>
    %92 = arith.mulf %87, %87 : vector<1x32xf32>
    %93 = arith.subf %91, %92 : vector<1x32xf32>
    %94 = vector.broadcast %87 : vector<1x32xf32> to vector<8x32xf32>
    %95 = arith.subf %78, %94 : vector<8x32xf32>
    %cst_77 = arith.constant 9.99999974E-6 : f32
    %96 = vector.broadcast %cst_77 : f32 to vector<1x32xf32>
    %97 = arith.addf %93, %96 : vector<1x32xf32>
    %98 = math.rsqrt %97 : vector<1x32xf32>
    %99 = vector.broadcast %98 : vector<1x32xf32> to vector<8x32xf32>
    %100 = arith.mulf %95, %99 : vector<8x32xf32>
    %c1_78 = arith.constant 1 : index
    %c0_79 = arith.constant 0 : index
    %101 = vector.load %arg7[%c1_78, %c0_79] : memref<3x32xf32, #tpu.memory_space<vmem>>, vector<1x32xf32>
    %102 = vector.broadcast %101 : vector<1x32xf32> to vector<8x32xf32>
    %103 = arith.mulf %100, %102 : vector<8x32xf32>
    %c2_80 = arith.constant 2 : index
    %c0_81 = arith.constant 0 : index
    %104 = vector.load %arg7[%c2_80, %c0_81] : memref<3x32xf32, #tpu.memory_space<vmem>>, vector<1x32xf32>
    %105 = vector.broadcast %104 : vector<1x32xf32> to vector<8x32xf32>
    %106 = arith.addf %103, %105 : vector<8x32xf32>
    %c0_82 = arith.constant 0 : index
    %c0_83 = arith.constant 0 : index
    %c0_84 = arith.constant 0 : index
    %107 = vector.load %arg9[%c0_82, %c0_83, %c0_84] : memref<3x4x8xf32, #tpu.memory_space<vmem>>, vector<1x4x8xf32>
    %108 = vector.shape_cast %107 : vector<1x4x8xf32> to vector<4x8xf32>
    %cst_85 = arith.constant dense<0.000000e+00> : vector<4x32xf32>
    %109 = tpu.matmul %108, %106, %cst_85 {dimension_numbers = #tpu.dot_dimension_numbers<[1], [0], [0], [1], [0, 0, 1, 1], [], []>} : vector<4x8xf32>, vector<8x32xf32>, vector<4x32xf32> -> vector<4x32xf32>
    %c0_86 = arith.constant 0 : index
    %c0_87 = arith.constant 0 : index
    %c0_88 = arith.constant 0 : index
    %110 = vector.load %arg10[%c0_86, %c0_87, %c0_88] : memref<3x32x16xf32, #tpu.memory_space<vmem>>, vector<1x32x16xf32>
    %111 = vector.shape_cast %110 : vector<1x32x16xf32> to vector<32x16xf32>
    %cst_89 = arith.constant dense<0.000000e+00> : vector<4x16xf32>
    %112 = tpu.matmul %109, %111, %cst_89 {dimension_numbers = #tpu.dot_dimension_numbers<[1], [0], [0], [1], [0, 0, 1, 1], [], []>} : vector<4x32xf32>, vector<32x16xf32>, vector<4x16xf32> -> vector<4x16xf32>
    %c1_90 = arith.constant 1 : index
    %c0_91 = arith.constant 0 : index
    %c0_92 = arith.constant 0 : index
    %113 = vector.load %arg9[%c1_90, %c0_91, %c0_92] : memref<3x4x8xf32, #tpu.memory_space<vmem>>, vector<1x4x8xf32>
    %114 = vector.shape_cast %113 : vector<1x4x8xf32> to vector<4x8xf32>
    %cst_93 = arith.constant dense<0.000000e+00> : vector<4x32xf32>
    %115 = tpu.matmul %114, %106, %cst_93 {dimension_numbers = #tpu.dot_dimension_numbers<[1], [0], [0], [1], [0, 0, 1, 1], [], []>} : vector<4x8xf32>, vector<8x32xf32>, vector<4x32xf32> -> vector<4x32xf32>
    %c1_94 = arith.constant 1 : index
    %c0_95 = arith.constant 0 : index
    %c0_96 = arith.constant 0 : index
    %116 = vector.load %arg10[%c1_94, %c0_95, %c0_96] : memref<3x32x16xf32, #tpu.memory_space<vmem>>, vector<1x32x16xf32>
    %117 = vector.shape_cast %116 : vector<1x32x16xf32> to vector<32x16xf32>
    %cst_97 = arith.constant dense<0.000000e+00> : vector<4x16xf32>
    %118 = tpu.matmul %115, %117, %cst_97 {dimension_numbers = #tpu.dot_dimension_numbers<[1], [0], [0], [1], [0, 0, 1, 1], [], []>} : vector<4x32xf32>, vector<32x16xf32>, vector<4x16xf32> -> vector<4x16xf32>
    %119 = arith.addf %112, %118 : vector<4x16xf32>
    %c2_98 = arith.constant 2 : index
    %c0_99 = arith.constant 0 : index
    %c0_100 = arith.constant 0 : index
    %120 = vector.load %arg9[%c2_98, %c0_99, %c0_100] : memref<3x4x8xf32, #tpu.memory_space<vmem>>, vector<1x4x8xf32>
    %121 = vector.shape_cast %120 : vector<1x4x8xf32> to vector<4x8xf32>
    %cst_101 = arith.constant dense<0.000000e+00> : vector<4x32xf32>
    %122 = tpu.matmul %121, %106, %cst_101 {dimension_numbers = #tpu.dot_dimension_numbers<[1], [0], [0], [1], [0, 0, 1, 1], [], []>} : vector<4x8xf32>, vector<8x32xf32>, vector<4x32xf32> -> vector<4x32xf32>
    %c2_102 = arith.constant 2 : index
    %c0_103 = arith.constant 0 : index
    %c0_104 = arith.constant 0 : index
    %123 = vector.load %arg10[%c2_102, %c0_103, %c0_104] : memref<3x32x16xf32, #tpu.memory_space<vmem>>, vector<1x32x16xf32>
    %124 = vector.shape_cast %123 : vector<1x32x16xf32> to vector<32x16xf32>
    %cst_105 = arith.constant dense<0.000000e+00> : vector<4x16xf32>
    %125 = tpu.matmul %122, %124, %cst_105 {dimension_numbers = #tpu.dot_dimension_numbers<[1], [0], [0], [1], [0, 0, 1, 1], [], []>} : vector<4x32xf32>, vector<32x16xf32>, vector<4x16xf32> -> vector<4x16xf32>
    %126 = arith.addf %119, %125 : vector<4x16xf32>
    %c0_106 = arith.constant 0 : index
    %c0_107 = arith.constant 0 : index
    %127 = vector.load %arg11[%c0_106, %c0_107] : memref<3x16xf32, #tpu.memory_space<vmem>>, vector<1x16xf32>
    %128 = vector.broadcast %127 : vector<1x16xf32> to vector<4x16xf32>
    %129 = arith.addf %126, %128 : vector<4x16xf32>
    %cst_108 = arith.constant 0.000000e+00 : f32
    %130 = vector.broadcast %cst_108 : f32 to vector<4x16xf32>
    %131 = arith.maximumf %129, %130 : vector<4x16xf32>
    %cst_109 = arith.constant dense<0.000000e+00> : vector<16xf32>
    %132 = vector.multi_reduction <add>, %131, %cst_109 [0] : vector<4x16xf32> to vector<16xf32>
    %133 = vector.shape_cast %132 : vector<16xf32> to vector<1x16xf32>
    %134 = arith.mulf %131, %131 : vector<4x16xf32>
    %cst_110 = arith.constant dense<0.000000e+00> : vector<16xf32>
    %135 = vector.multi_reduction <add>, %134, %cst_110 [0] : vector<4x16xf32> to vector<16xf32>
    %136 = vector.shape_cast %135 : vector<16xf32> to vector<1x16xf32>
    %c0_111 = arith.constant 0 : index
    %c0_112 = arith.constant 0 : index
    %137 = vector.load %arg12[%c0_111, %c0_112] : memref<16x16xf32, #tpu.memory_space<vmem>>, vector<16x16xf32>
    %cst_113 = arith.constant dense<0.000000e+00> : vector<1x16xf32>
    %138 = tpu.matmul %133, %137, %cst_113 {dimension_numbers = #tpu.dot_dimension_numbers<[1], [0], [0], [1], [0, 0, 1, 1], [], []>} : vector<1x16xf32>, vector<16x16xf32>, vector<1x16xf32> -> vector<1x16xf32>
    %cst_114 = arith.constant 1.250000e-01 : f32
    %139 = vector.broadcast %cst_114 : f32 to vector<1x16xf32>
    %140 = arith.mulf %138, %139 : vector<1x16xf32>
    %c0_115 = arith.constant 0 : index
    %c0_116 = arith.constant 0 : index
    %141 = vector.load %arg12[%c0_115, %c0_116] : memref<16x16xf32, #tpu.memory_space<vmem>>, vector<16x16xf32>
    %cst_117 = arith.constant dense<0.000000e+00> : vector<1x16xf32>
    %142 = tpu.matmul %136, %141, %cst_117 {dimension_numbers = #tpu.dot_dimension_numbers<[1], [0], [0], [1], [0, 0, 1, 1], [], []>} : vector<1x16xf32>, vector<16x16xf32>, vector<1x16xf32> -> vector<1x16xf32>
    %cst_118 = arith.constant 1.250000e-01 : f32
    %143 = vector.broadcast %cst_118 : f32 to vector<1x16xf32>
    %144 = arith.mulf %142, %143 : vector<1x16xf32>
    %145 = arith.mulf %140, %140 : vector<1x16xf32>
    %146 = arith.subf %144, %145 : vector<1x16xf32>
    %147 = vector.broadcast %140 : vector<1x16xf32> to vector<4x16xf32>
    %148 = arith.subf %131, %147 : vector<4x16xf32>
    %cst_119 = arith.constant 9.99999974E-6 : f32
    %149 = vector.broadcast %cst_119 : f32 to vector<1x16xf32>
    %150 = arith.addf %146, %149 : vector<1x16xf32>
    %151 = math.rsqrt %150 : vector<1x16xf32>
    %152 = vector.broadcast %151 : vector<1x16xf32> to vector<4x16xf32>
    %153 = arith.mulf %148, %152 : vector<4x16xf32>
    %c1_120 = arith.constant 1 : index
    %c0_121 = arith.constant 0 : index
    %154 = vector.load %arg11[%c1_120, %c0_121] : memref<3x16xf32, #tpu.memory_space<vmem>>, vector<1x16xf32>
    %155 = vector.broadcast %154 : vector<1x16xf32> to vector<4x16xf32>
    %156 = arith.mulf %153, %155 : vector<4x16xf32>
    %c2_122 = arith.constant 2 : index
    %c0_123 = arith.constant 0 : index
    %157 = vector.load %arg11[%c2_122, %c0_123] : memref<3x16xf32, #tpu.memory_space<vmem>>, vector<1x16xf32>
    %158 = vector.broadcast %157 : vector<1x16xf32> to vector<4x16xf32>
    %159 = arith.addf %156, %158 : vector<4x16xf32>
    %c0_124 = arith.constant 0 : index
    %c0_125 = arith.constant 0 : index
    %160 = vector.load %arg13[%c0_124, %c0_125] : memref<4x16xf32, #tpu.memory_space<vmem>>, vector<4x16xf32>
    tpu.vector_store %arg13[%c0_124, %c0_125], %159 {strides = array<i32>} : memref<4x16xf32, #tpu.memory_space<vmem>>, vector<4x16xf32>,
    return
  }
}

</mosaic_0001>

<bundles_post_ra>
// kernel: tile.48
= control target key start
LH: loop header
LB: loop body
LE: loop exit
PB: predicated region body
PF: predicated region fallthrough
CT: control target
= control target key end

     0   :  { %s22_s0 = inlined_call_operand.vmem [shape: f32[8], index: 0, kind: input, shape index: {}]   ;;  %s23_s1 = inlined_call_operand.vmem [shape: f32[8,8], index: 1, kind: output, shape index: {}]  }
   0x1   :  { %v4_v0 = vld [vmem:[%s22_s0] ss:$0 sm:$0xff] }
   0x2   :  { %5 = vst [vmem:[%s23_s1] sm:$0xff] %v4_v0 }

// kernel: tile.57
= control target key start
LH: loop header
LB: loop body
LE: loop exit
PB: predicated region body
PF: predicated region fallthrough
CT: control target
= control target key end

     0   :  { %s67_s10 = smov 56   ;;  %s68_s11 = smov 40   ;;  %vm3_vm0 = vcmask 64512   ;;  %vm9_vm1 = vcmask 523712   ;;  %vm15_vm2 = vcmask 458112   ;;  %vm21_vm3 = vcmask 392512   ;;  %s111_s0 = inlined_call_operand.vmem [shape: f32[8,8], index: 0, kind: input, shape index: {}]   ;;  %s112_s1 = inlined_call_operand.vmem [shape: f32[1,64], index: 1, kind: output, shape index: {}]  }
   0x1   :  { %v53_v0 = vld [vmem:[%s111_s0 + $0x7] sm:$0x1]   ;;  %v55_v1 = vld [vmem:[%s111_s0 + $0x5] sm:$0x1]   ;;  %v54_v2 = vld [vmem:[%s111_s0 + $0x6] sm:$0x1]  }
   0x2   :  { %7 = vrot.lane.b32.xlu0 %v53_v0, %s67_s10  ;;  %19 = vrot.lane.b32.xlu1 %v55_v1, %s68_s11  ;;  %v56_v3 = vld [vmem:[%s111_s0 + $0x4] sm:$0x1]   ;;  %v2_v4 = vld [vmem:[%s111_s0] sm:$0x1]   ;;  %s69_s18 = smov 48   ;;  %s70_s19 = smov 32  }
   0x3   :  { %4 = vst.msk [vmem:[#allocation0] sm:$0x1] %vm3_vm0, %v2_v4   ;;  %v57_v5 = vld [vmem:[%s111_s0 + $0x3] sm:$0x1]   ;;  %v58_v6 = vld [vmem:[%s111_s0 + $0x2] sm:$0x1]  }
   0x4   :  { %s71_s24 = smov 24   ;;  %s72_s25 = smov 16   ;;  %v59_v7 = vld [vmem:[%s111_s0 + $0x1] sm:$0x1]   ;;  %vm27_vm4 = vcmask 326912   ;;  %vm33_vm5 = vcmask 261312  }
   0x5   :  { %s73_s0 = smov 8   ;;  %vm39_vm6 = vcmask 195712   ;;  %vm45_vm7 = vcmask 130112  }
   0x6   :  { %13 = vrot.lane.b32.xlu0 %v54_v2, %s69_s18  ;;  %25 = vrot.lane.b32.xlu1 %v56_v3, %s70_s19 }
   0xa   :  { %31 = vrot.lane.b32.xlu0 %v57_v5, %s71_s24  ;;  %37 = vrot.lane.b32.xlu1 %v58_v6, %s72_s25 }
   0xe   :  { %43 = vrot.lane.b32.xlu0 %v59_v7, %s73_s0 }
  0x74   :  { %v8_v8 = vpop.permute.xlu0 %7   ;;  %v20_v9 = vpop.permute.xlu1 %19  }
  0x75   :  { %10 = vst.msk [vmem:[#allocation0] sm:$0x1] %vm9_vm1, %v8_v8  }
  0x78   :  { %v14_v10 = vpop.permute.xlu0 %13   ;;  %v26_v11 = vpop.permute.xlu1 %25  }
  0x79   :  { %16 = vst.msk [vmem:[#allocation0] sm:$0x1] %vm15_vm2, %v14_v10  }
  0x7a   :  { %22 = vst.msk [vmem:[#allocation0] sm:$0x1] %vm21_vm3, %v20_v9  }
  0x7b   :  { %28 = vst.msk [vmem:[#allocation0] sm:$0x1] %vm27_vm4, %v26_v11  }
  0x7c   :  { %v32_v12 = vpop.permute.xlu0 %31   ;;  %v38_v13 = vpop.permute.xlu1 %37  }
  0x7d   :  { %34 = vst.msk [vmem:[#allocation0] sm:$0x1] %vm33_vm5, %v32_v12  }
  0x7e   :  { %40 = vst.msk [vmem:[#allocation0] sm:$0x1] %vm39_vm6, %v38_v13  }
  0x80   :  { %v44_v14 = vpop.permute.xlu0 %43  }
  0x81   :  { %46 = vst.msk [vmem:[#allocation0] sm:$0x1] %vm45_vm7, %v44_v14  }
  0x88   :  { %v50_v15 = vld [vmem:[#allocation0] sm:$0x1] }
  0x89   :  { %52 = vst [vmem:[%s112_s1] sm:$0x1] %v50_v15 }

// kernel: tile.63
= control target key start
LH: loop header
LB: loop body
LE: loop exit
PB: predicated region body
PF: predicated region fallthrough
CT: control target
= control target key end

     0   :  { %s22_s0 = inlined_call_operand.vmem [shape: f32[8], index: 0, kind: input, shape index: {}]   ;;  %s23_s1 = inlined_call_operand.vmem [shape: f32[4,8], index: 1, kind: output, shape index: {}]  }
   0x1   :  { %v4_v0 = vld [vmem:[%s22_s0] ss:$0 sm:$0xff] }
   0x2   :  { %5 = vst [vmem:[%s23_s1] sm:$0xf] %v4_v0 }

// kernel: tile.72
= control target key start
LH: loop header
LB: loop body
LE: loop exit
PB: predicated region body
PF: predicated region fallthrough
CT: control target
= control target key end

     0   :  { %vm7_vm0 = vcmask 64512   ;;  %s37_s8 = smov 8   ;;  %s38_s9 = smov 16   ;;  %vm13_vm1 = vcmask 261312   ;;  %vm19_vm2 = vcmask 195712   ;;  %vm25_vm3 = vcmask 130112   ;;  %s55_s0 = inlined_call_operand.vmem [shape: f32[4,8], index: 0, kind: input, shape index: {}]   ;;  %s56_s1 = inlined_call_operand.vmem [shape: f32[1,32], index: 1, kind: output, shape index: {}]  }
   0x1   :  { %v4_v0 = vld [vmem:[%s55_s0] sm:$0xf]  ;;  %s36_s0 = smov 24  }
   0x2   :  { %5 = vst [vmem:[#allocation1] sm:$0xf] %v4_v0 }
   0x9   :  { %v10_v1 = vld [vmem:[#allocation1 + $0x3] sm:$0x1]   ;;  %v22_v2 = vld [vmem:[#allocation1 + $0x1] sm:$0x1]   ;;  %v6_v3 = vld [vmem:[#allocation1] sm:$0x1]  }
   0xa   :  { %11 = vrot.lane.b32.xlu0 %v10_v1, %s36_s0  ;;  %23 = vrot.lane.b32.xlu1 %v22_v2, %s37_s8  ;;  %v16_v4 = vld [vmem:[#allocation1 + $0x2] sm:$0x1]   ;;  %8 = vst.msk [vmem:[#allocation0] sm:$0x1] %vm7_vm0, %v6_v3  }
   0xe   :  { %17 = vrot.lane.b32.xlu0 %v16_v4, %s38_s9 }
  0x7c   :  { %v12_v5 = vpop.permute.xlu0 %11   ;;  %v24_v6 = vpop.permute.xlu1 %23  }
  0x7d   :  { %14 = vst.msk [vmem:[#allocation0] sm:$0x1] %vm13_vm1, %v12_v5  }
  0x80   :  { %v18_v7 = vpop.permute.xlu0 %17  }
  0x81   :  { %20 = vst.msk [vmem:[#allocation0] sm:$0x1] %vm19_vm2, %v18_v7  }
  0x82   :  { %26 = vst.msk [vmem:[#allocation0] sm:$0x1] %vm25_vm3, %v24_v6  }
  0x89   :  { %v30_v8 = vld [vmem:[#allocation0] sm:$0x1] }
  0x8a   :  { %32 = vst [vmem:[%s56_s1] sm:$0x1] %v30_v8 }

// kernel: tile.78
= control target key start
LH: loop header
LB: loop body
LE: loop exit
PB: predicated region body
PF: predicated region fallthrough
CT: control target
= control target key end

     0   :  { %s22_s0 = inlined_call_operand.vmem [shape: f32[8], index: 0, kind: input, shape index: {}]   ;;  %s23_s1 = inlined_call_operand.vmem [shape: f32[2,8], index: 1, kind: output, shape index: {}]  }
   0x1   :  { %v4_v0 = vld [vmem:[%s22_s0] ss:$0 sm:$0xff] }
   0x2   :  { %5 = vst [vmem:[%s23_s1] sm:$0x3] %v4_v0 }

// kernel: tile.87
= control target key start
LH: loop header
LB: loop body
LE: loop exit
PB: predicated region body
PF: predicated region fallthrough
CT: control target
= control target key end

     0   :  { %vm7_vm0 = vcmask 64512   ;;  %vm13_vm1 = vcmask 130112   ;;  %s39_s0 = inlined_call_operand.vmem [shape: f32[2,8], index: 0, kind: input, shape index: {}]   ;;  %s40_s1 = inlined_call_operand.vmem [shape: f32[1,16], index: 1, kind: output, shape index: {}]  }
   0x1   :  { %v4_v0 = vld [vmem:[%s39_s0] sm:$0x3]  ;;  %s22_s0 = smov 8  }
   0x2   :  { %5 = vst [vmem:[#allocation1] sm:$0x3] %v4_v0 }
   0x9   :  { %v10_v1 = vld [vmem:[#allocation1 + $0x1] sm:$0x1]   ;;  %v6_v2 = vld [vmem:[#allocation1] sm:$0x1]  }
   0xa   :  { %11 = vrot.lane.b32.xlu0 %v10_v1, %s22_s0  ;;  %8 = vst.msk [vmem:[#allocation0] sm:$0x1] %vm7_vm0, %v6_v2  }
  0x7c   :  { %v12_v3 = vpop.permute.xlu0 %11  }
  0x7d   :  { %14 = vst.msk [vmem:[#allocation0] sm:$0x1] %vm13_vm1, %v12_v3  }
  0x84   :  { %v18_v4 = vld [vmem:[#allocation0] sm:$0x1] }
  0x85   :  { %20 = vst [vmem:[%s40_s1] sm:$0x1] %v18_v4 }

// kernel: conv_input_model.1
= control target key start
LH: loop header
LB: loop body
LE: loop exit
PB: predicated region body
PF: predicated region fallthrough
CT: control target
= control target key end

     0   :  { %vm50_vm0 = vcmask 261120   ;;  %vm229_vm1 = vcmask 392192   ;;  %v2788_v48 = vmov 0.0|0.0   ;;  %vm2789_vm2 = vmmov 0   ;;  %s3276_s0 = inlined_call_operand.vmem [shape: f32[32,48], index: 0, kind: input, shape index: {}]   ;;  %s3277_s1 = inlined_call_operand.vmem [shape: f32[3,16,32], index: 1, kind: input, shape index: {}]   ;;  %s3278_s2 = inlined_call_operand.vmem [shape: f32[3,48,64], index: 2, kind: input, shape index: {}]   ;;  %s3279_s4 = inlined_call_operand.vmem [shape: f32[64,64], index: 4, kind: input, shape index: {}]   ;;  %s3280_s3 = inlined_call_operand.vmem [shape: f32[3,64], index: 3, kind: input, shape index: {}]   ;;  %s3281_s6 = inlined_call_operand.vmem [shape: f32[3,64,32], index: 6, kind: input, shape index: {}]   ;;  %s3282_s5 = inlined_call_operand.vmem [shape: f32[3,8,16], index: 5, kind: input, shape index: {}]   ;;  %s3283_s8 = inlined_call_operand.vmem [shape: f32[32,32], index: 8, kind: input, shape index: {}]   ;;  %s3284_s7 = inlined_call_operand.vmem [shape: f32[3,32], index: 7, kind: input, shape index: {}]   ;;  %s3285_s10 = inlined_call_operand.vmem [shape: f32[3,32,16], index: 10, kind: input, shape index: {}]   ;;  %s3286_s9 = inlined_call_operand.vmem [shape: f32[3,4,8], index: 9, kind: input, shape index: {}]   ;;  %s3287_s12 = inlined_call_operand.vmem [shape: f32[16,16], index: 12, kind: input, shape index: {}]   ;;  %s3288_s11 = inlined_call_operand.vmem [shape: f32[3,16], index: 11, kind: input, shape index: {}]   ;;  %s3289_s13 = inlined_call_operand.vmem [shape: f32[4,16], index: 13, kind: output, shape index: {}]  }
   0x1   :  { %v44_v0 = vld [vmem:[%s3276_s0] sm:$0xff]  ;;  %v45_v1 = vld [vmem:[%s3276_s0 + $0x8] sm:$0xff]  ;;  %v46_v2 = vld [vmem:[%s3276_s0 + $0x10] sm:$0xff]  ;;  %v2790_v58 = vmov 0.0   ;;  %vm575_vm3 = vcmask 523264   ;;  %vm783_vm4 = vcmask 130048  }
   0x2   :  { %v2610_v3 = vpack.c.bf16 %v45_v1, %v44_v0  ;;  %v47_v4 = vld [vmem:[%s3276_s0 + $0x18] sm:$0xff]  ;;  %v2118_v5 = vld [vmem:[%s3277_s1 + $0x10] sm:$0xff]  ;;  %v48_v7 = vld [vmem:[%s3277_s1] sm:$0xff]  ;;  %vm1454_vm5 = vcmask 64512   ;;  %vm1919_vm6 = vcmask 125952  }
   0x3   :  { %v2614_v6 = vpack.c.bf16 %v47_v4, %v46_v2  ;;  %2351 = vmatprep.mubr.msk.f32.mxu1 %vm50_vm0, %v2118_v5  ;;  %v2122_v8 = vld [vmem:[%s3278_s2 + $0x30] sm:$0xff]  ;;  %v2123_v9 = vld [vmem:[%s3278_s2 + $0x38] sm:$0xff]  ;;  %2340 = vmatprep.mubr.msk.f32.mxu0 %vm50_vm0, %v48_v7  ;;  %v2124_v11 = vld [vmem:[%s3278_s2 + $0x40] sm:$0xff] }
   0x4   :  { %2619 = vmatprep.subr.bf16.mxu1 %v2610_v3  ;;  %2611 = vmatprep.subr.bf16.mxu0 %v2610_v3  ;;  %v2626_v10 = vpack.c.bf16 %v2123_v9, %v2122_v8  ;;  %v2125_v12 = vld [vmem:[%s3278_s2 + $0x48] sm:$0xff]  ;;  %v2119_v13 = vld [vmem:[%s3277_s1 + $0x18] sm:$0xff]  ;;  %v2132_v15 = vld [vmem:[%s3277_s1 + $0x20] sm:$0xff] }
   0x5   :  { %2621 = vmatpush3.bf16.msra.mxu1 %v2610_v3  ;;  %2613 = vmatpush3.bf16.msra.mxu0 %v2610_v3  ;;  %v49_v14 = vld [vmem:[%s3277_s1 + $0x8] sm:$0xff]  ;;  %v2630_v16 = vpack.c.bf16 %v2125_v12, %v2124_v11  ;;  %v2126_v17 = vld [vmem:[%s3278_s2 + $0x50] sm:$0xff]  ;;  %v2127_v18 = vld [vmem:[%s3278_s2 + $0x58] sm:$0xff] }
   0x6   :  { %2623 = vmatprep.subr.bf16.mxu1 %v2614_v6  ;;  %2615 = vmatprep.subr.bf16.mxu0 %v2614_v6  ;;  %v2634_v19 = vpack.c.bf16 %v2127_v18, %v2126_v17  ;;  %v2133_v20 = vld [vmem:[%s3277_s1 + $0x28] sm:$0xff]  ;;  %v132_v21 = vld [vmem:[%s3278_s2] sm:$0xff]  ;;  %v134_v24 = vld [vmem:[%s3278_s2 + $0x10] sm:$0xff] }
   0x7   :  { %v133_v22 = vld [vmem:[%s3278_s2 + $0x8] sm:$0xff]  ;;  %v135_v25 = vld [vmem:[%s3278_s2 + $0x18] sm:$0xff]  ;;  %v136_v31 = vld [vmem:[%s3278_s2 + $0x20] sm:$0xff] }
   0x8   :  { %v2638_v23 = vpack.c.bf16 %v133_v22, %v132_v21  ;;  %v2642_v29 = vpack.c.bf16 %v135_v25, %v134_v24  ;;  %v137_v32 = vld [vmem:[%s3278_s2 + $0x28] sm:$0xff]  ;;  %v2136_v34 = vld [vmem:[%s3278_s2 + $0x60] sm:$0xff]  ;;  %v2138_v39 = vld [vmem:[%s3278_s2 + $0x70] sm:$0xff] }
   0x9   :  { %2625 = vmatpush3.bf16.msra.mxu1 %v2614_v6  ;;  %2617 = vmatpush3.bf16.msra.mxu0 %v2614_v6  ;;  %v2646_v33 = vpack.c.bf16 %v137_v32, %v136_v31  ;;  %v2137_v35 = vld [vmem:[%s3278_s2 + $0x68] sm:$0xff]  ;;  %v2139_v40 = vld [vmem:[%s3278_s2 + $0x78] sm:$0xff]  ;;  %v2140_v42 = vld [vmem:[%s3278_s2 + $0x80] sm:$0xff] }
   0xa   :  { %2651 = vmatprep.subr.bf16.mxu1 %v2610_v3  ;;  %2627 = vmatprep.subr.bf16.mxu0 %v2626_v10  ;;  %v2658_v37 = vpack.c.bf16 %v2137_v35, %v2136_v34  ;;  %v2662_v41 = vpack.c.bf16 %v2139_v40, %v2138_v39  ;;  %v2141_v43 = vld [vmem:[%s3278_s2 + $0x88] sm:$0xff]  ;;  %v596_v45 = vld [vmem:[%s3279_s4] sm:$0xff]  ;;  %v598_v49 = vld [vmem:[%s3279_s4 + $0x10] sm:$0xff] }
   0xb   :  { %v2666_v44 = vpack.c.bf16 %v2141_v43, %v2140_v42  ;;  %v597_v46 = vld [vmem:[%s3279_s4 + $0x8] sm:$0xff]  ;;  %v599_v50 = vld [vmem:[%s3279_s4 + $0x18] sm:$0xff]  ;;  %v600_v52 = vld [vmem:[%s3279_s4 + $0x20] sm:$0xff] }
   0xc   :  { %2352 = vmatmul.mubr.msk.f32.vlgmr.msra.gmra.mrb[0].mxu1 %vm50_vm0, %v2119_v13  ;;  %2341 = vmatmul.mubr.msk.f32.vlgmr.msra.gmra.mrb[0].mxu0 %vm50_vm0, %v49_v14  ;;  %v2671_v47 = vpack.c.bf16 %v597_v46, %v596_v45  ;;  %v2674_v51 = vpack.c.bf16 %v599_v50, %v598_v49  ;;  %v601_v53 = vld [vmem:[%s3279_s4 + $0x28] sm:$0xff]  ;;  %v602_v55 = vld [vmem:[%s3279_s4 + $0x30] sm:$0xff]  ;;  %v603_v56 = vld [vmem:[%s3279_s4 + $0x38] sm:$0xff] }
   0xd   :  { %2653 = vmatpush3.bf16.msra.mxu1 %v2610_v3  ;;  %2392 = vmatprep.mubr.msk.f32.mxu1 %vm50_vm0, %v2132_v15  ;;  %v2677_v54 = vpack.c.bf16 %v601_v53, %v600_v52  ;;  %v2680_v57 = vpack.c.bf16 %v603_v56, %v602_v55  ;;  %v2144_v59 = vld [vmem:[%s3280_s3] ss:$0 sm:$0xff]  ;;  %v2154_v25 = vld [vmem:[%s3281_s6 + $0x50] sm:$0xff]  ;;  %v2147_v49 = vld [vmem:[%s3280_s3 + $0x1] ss:$0 sm:$0xff] }
   0xe   :  { %2655 = vmatprep.subr.bf16.mxu1 %v2614_v6  ;;  %2629 = vmatpush3.bf16.msra.mxu0 %v2626_v10  ;;  %v2152_v22 = vld [vmem:[%s3281_s6 + $0x40] sm:$0xff] }
   0xf   :  { %2631 = vmatprep.subr.bf16.mxu0 %v2630_v16  ;;  %v2148_v52 = vld [vmem:[%s3280_s3 + $0x2] ss:$0 sm:$0xff] }
  0x11   :  { %2657 = vmatpush3.bf16.msra.mxu1 %v2614_v6 }
  0x12   :  { %2633 = vmatpush3.bf16.msra.mxu0 %v2630_v16  ;;  %2670 = vmatprep.subr.bf16.mxu1 %v2788_v48 }
  0x13   :  { %2635 = vmatprep.subr.bf16.mxu0 %v2634_v19 }
  0x14   :  { %2393 = vmatmul.mubr.msk.f32.vlgmr.msra.gmra.mrb[2].mxu1 %vm50_vm0, %v2133_v20 }
  0x15   :  { %2672 = vmatpush3.bf16.msra.mxu1 %v2671_v47  ;;  %2426 = vmatprep.mubr.msk.f32.mxu1 %vm2789_vm2, %v2790_v58 }
  0x16   :  { %2637 = vmatpush3.bf16.msra.mxu0 %v2634_v19  ;;  %2673 = vmatprep.subr.bf16.mxu1 %v2788_v48 }
  0x17   :  { %2639 = vmatprep.subr.bf16.mxu0 %v2638_v23 }
  0x19   :  { %2675 = vmatpush3.bf16.msra.mxu1 %v2674_v51 }
  0x1a   :  { %2676 = vmatprep.subr.bf16.mxu1 %v2788_v48 }
  0x1d   :  { %2678 = vmatpush3.bf16.msra.mxu1 %v2677_v54 }
  0x1e   :  { %2679 = vmatprep.subr.bf16.mxu1 %v2788_v48 }
  0x21   :  { %2681 = vmatpush3.bf16.msra.mxu1 %v2680_v57 }
  0x22   :  { %2682 = vmatprep.subr.bf16.mxu1 %v2788_v48 }
  0xdf   :  { %v2353_v26 = vpop.f32.mrb[0].mxu1  ;;  %v2342_v27 = vpop.f32.mrb[0].mxu0 }
  0xe0   :  { %v213_v28 = vpop.f32.mrb[1].mxu1  ;;  %v123_v30 = vpop.f32.mrb[1].mxu0 }
  0xe1   :  { %2366 = vmatprep.mubr.msk.f32.mxu0 %vm229_vm1, %v213_v28  ;;  %v2156_v28 = vld [vmem:[%s3281_s6 + $0x60] sm:$0xff] }
  0xe2   :  { %2367 = vmatmul.mubr.msk.f32.vlgmr.msra.gmra.mrb[2].mxu0 %vm229_vm1, %v2353_v26  ;;  %v2155_v26 = vld [vmem:[%s3281_s6 + $0x58] sm:$0xff] }
  0xe3   :  { %2641 = vmatpush3.bf16.msra.mxu0 %v2638_v23  ;;  %2381 = vmatprep.mubr.msk.f32.mxu0 %vm229_vm1, %v123_v30  ;;  %v2153_v23 = vld [vmem:[%s3281_s6 + $0x48] sm:$0xff] }
  0xe4   :  { %2643 = vmatprep.subr.bf16.mxu0 %v2642_v29  ;;  %v2701_v24 = vpack.c.bf16 %v2153_v23, %v2152_v22  ;;  %v2162_v22 = vld [vmem:[%s3282_s5 + $0x10] sm:$0xff]  ;;  %v2168_v23 = vld [vmem:[%s3281_s6 + $0xa0] sm:$0xff] }
  0xe7   :  { %2645 = vmatpush3.bf16.msra.mxu0 %v2642_v29  ;;  %v2394_v36 = vpop.f32.mrb[2].mxu1  ;;  %v2157_v29 = vld [vmem:[%s3281_s6 + $0x68] sm:$0xff] }
  0xe8   :  { %2647 = vmatprep.subr.bf16.mxu0 %v2646_v33  ;;  %v467_v38 = vpop.f32.mrb[3].mxu1  ;;  %v2707_v30 = vpack.c.bf16 %v2157_v29, %v2156_v28 }
  0xeb   :  { %2649 = vmatpush3.bf16.msra.mxu0 %v2646_v33 }
  0xec   :  { %2659 = vmatprep.subr.bf16.mxu0 %v2658_v37 }
  0xee   :  { %2382 = vmatmul.mubr.msk.f32.vlgmr.msra.gmra.mrb[2].mxu0 %vm229_vm1, %v2342_v27  ;;  %v2704_v27 = vpack.c.bf16 %v2155_v26, %v2154_v25  ;;  %v2170_v26 = vld [vmem:[%s3281_s6 + $0xb0] sm:$0xff] }
  0xef   :  { %2661 = vmatpush3.bf16.msra.mxu0 %v2658_v37  ;;  %2407 = vmatprep.mubr.msk.f32.mxu0 %vm229_vm1, %v467_v38  ;;  %v754_v38 = vlaneseq }
  0xf0   :  { %2663 = vmatprep.subr.bf16.mxu0 %v2662_v41 }
  0xf3   :  { %2665 = vmatpush3.bf16.msra.mxu0 %v2662_v41  ;;  %v755_v41 = vshrl.u32 %v754_v38, 7 }
  0xf4   :  { %2667 = vmatprep.subr.bf16.mxu0 %v2666_v44 }
  0xf5   :  { %v3039_v42 = vsub.s32 0, %v755_v41 }
  0xf7   :  { %2669 = vmatpush3.bf16.msra.mxu0 %v2666_v44 }
  0xf8   :  { %2694 = vmatprep.subr.bf16.mxu0 %v2788_v48 }
  0xfa   :  { %2408 = vmatmul.mubr.msk.f32.vlgmr.msra.gmra.mrb[2].mxu0 %vm229_vm1, %v2394_v36 }
  0xfb   :  { %2452 = vmatprep.mubr.msk.f32.mxu0 %vm2789_vm2, %v2790_v58 }
 0x1cd   :  { %v2409_v60 = vpop.f32.mrb[2].mxu0 }
 0x1ce   :  { %v572_v61 = vadd.f32 %v2409_v60, %v2144_v59  ;;  %v555_v62 = vpop.f32.mrb[3].mxu0  ;;  %v857_v60 = vld [vmem:[%s3281_s6] sm:$0xff] }
 0x1cf   :  { %v571_v63 = vadd.f32 %v2144_v59, %v555_v62  ;;  %v782_v59 = vld [vmem:[%s3282_s5] sm:$0xff]  ;;  %v2150_v62 = vld [vmem:[%s3282_s5 + $0x8] sm:$0xff] }
 0x1d0   :  { %v2994_v0 = vmax.f32 %v572_v61, 0.0  ;;  %v858_v61 = vld [vmem:[%s3281_s6 + $0x8] sm:$0xff] }
 0x1d1   :  { %v2996_v1 = vmax.f32 %v571_v63, 0.0  ;;  %v2713_v63 = vpack.c.bf16 %v858_v61, %v857_v60 }
 0x1d2   :  { %v577_v2 = vsel %vm575_vm3, %v2994_v0, 0.0  ;;  %v586_v3 = vmul.f32 %v2994_v0, %v2994_v0 }
 0x1d3   :  { %v576_v4 = vsel %vm575_vm3, %v2996_v1, 0.0  ;;  %v585_v5 = vmul.f32 %v2996_v1, %v2996_v1 }
 0x1d4   :  { %v578_v6 = vadd.f32 %v577_v2, %v576_v4  ;;  %v588_v7 = vsel %vm575_vm3, %v586_v3, 0.0  ;;  %v861_v3 = vld [vmem:[%s3281_s6 + $0x20] sm:$0xff]  ;;  %v862_v4 = vld [vmem:[%s3281_s6 + $0x28] sm:$0xff] }
 0x1d5   :  { %v587_v8 = vsel %vm575_vm3, %v585_v5, 0.0  ;;  %v2719_v5 = vpack.c.bf16 %v862_v4, %v861_v3 }
 0x1d6   :  { %v579_v9 = vrot.slane %v578_v6, 4  ;;  %v589_v11 = vadd.f32 %v588_v7, %v587_v8  ;;  %v864_v7 = vld [vmem:[%s3281_s6 + $0x38] sm:$0xff] }
 0x1d8   :  { %v580_v10 = vadd.f32 %v579_v9, %v578_v6  ;;  %v590_v14 = vrot.slane %v589_v11, 4  ;;  %v863_v6 = vld [vmem:[%s3281_s6 + $0x30] sm:$0xff] }
 0x1d9   :  { %v2722_v8 = vpack.c.bf16 %v864_v7, %v863_v6  ;;  %v2158_v9 = vld [vmem:[%s3281_s6 + $0x70] sm:$0xff] }
 0x1da   :  { %v581_v12 = vrot.slane %v580_v10, 2  ;;  %v591_v16 = vadd.f32 %v590_v14, %v589_v11 }
 0x1dc   :  { %v582_v13 = vadd.f32 %v581_v12, %v580_v10  ;;  %v592_v18 = vrot.slane %v591_v16, 2  ;;  %v2159_v10 = vld [vmem:[%s3281_s6 + $0x78] sm:$0xff]  ;;  %v2164_v12 = vld [vmem:[%s3281_s6 + $0x80] sm:$0xff] }
 0x1dd   :  { %v2710_v11 = vpack.c.bf16 %v2159_v10, %v2158_v9 }
 0x1de   :  { %v583_v15 = vrot.slane %v582_v13, 1  ;;  %v593_v19 = vadd.f32 %v592_v18, %v591_v16  ;;  %v2166_v16 = vld [vmem:[%s3281_s6 + $0x90] sm:$0xff] }
 0x1e0   :  { %v584_v17 = vadd.f32 %v583_v15, %v582_v13  ;;  %v594_v20 = vrot.slane %v593_v19, 1  ;;  %v2165_v13 = vld [vmem:[%s3281_s6 + $0x88] sm:$0xff] }
 0x1e1   :  { %v2728_v14 = vpack.c.bf16 %v2165_v13, %v2164_v12 }
 0x1e2   :  { %2427 = vmatmul.mubr.msk.f32.vlgmr.msra.gmra.mrb[4].mxu1 %vm575_vm3, %v584_v17  ;;  %v595_v21 = vadd.f32 %v594_v20, %v593_v19  ;;  %v2167_v17 = vld [vmem:[%s3281_s6 + $0x98] sm:$0xff] }
 0x1e3   :  { %2684 = vmatpush3.bf16.msra.mxu1 %v2671_v47  ;;  %2445 = vmatprep.mubr.msk.f32.mxu1 %vm2789_vm2, %v2790_v58  ;;  %v2731_v19 = vpack.c.bf16 %v2167_v17, %v2166_v16  ;;  %v2177_v17 = vld [vmem:[%s3284_s7 + $0x2] ss:$0 sm:$0xff] }
 0x1e4   :  { %2685 = vmatprep.subr.bf16.mxu1 %v2788_v48 }
 0x1e7   :  { %2687 = vmatpush3.bf16.msra.mxu1 %v2674_v51 }
 0x1e8   :  { %2688 = vmatprep.subr.bf16.mxu1 %v2788_v48 }
 0x1eb   :  { %2690 = vmatpush3.bf16.msra.mxu1 %v2677_v54 }
 0x1ec   :  { %2691 = vmatprep.subr.bf16.mxu1 %v2788_v48 }
 0x1ef   :  { %2693 = vmatpush3.bf16.msra.mxu1 %v2680_v57 }
 0x1f0   :  { %2700 = vmatprep.subr.bf16.mxu1 %v2788_v48 }
 0x1f2   :  { %2446 = vmatmul.mubr.msk.f32.vlgmr.msra.gmra.mrb[6].mxu1 %vm575_vm3, %v595_v21 }
 0x1f3   :  { %2478 = vmatprep.mubr.msk.f32.mxu1 %vm2789_vm2, %v2790_v58  ;;  %2702 = vmatpush3.bf16.msra.mxu1 %v2701_v24  ;;  %v2169_v24 = vld [vmem:[%s3281_s6 + $0xa8] sm:$0xff] }
 0x1f4   :  { %2703 = vmatprep.subr.bf16.mxu1 %v2788_v48  ;;  %v2734_v25 = vpack.c.bf16 %v2169_v24, %v2168_v23  ;;  %v2179_v24 = vld [vmem:[%s3286_s9 + $0x4] sm:$0xf] }
 0x1f7   :  { %2705 = vmatpush3.bf16.msra.mxu1 %v2704_v27  ;;  %v2171_v27 = vld [vmem:[%s3281_s6 + $0xb8] sm:$0xff] }
 0x1f8   :  { %2706 = vmatprep.subr.bf16.mxu1 %v2788_v48  ;;  %v2737_v28 = vpack.c.bf16 %v2171_v27, %v2170_v26 }
 0x1fb   :  { %2708 = vmatpush3.bf16.msra.mxu1 %v2707_v30 }
 0x1fc   :  { %2709 = vmatprep.subr.bf16.mxu1 %v2788_v48 }
 0x1ff   :  { %2711 = vmatpush3.bf16.msra.mxu1 %v2710_v11 }
 0x200   :  { %2724 = vmatprep.subr.bf16.mxu1 %v2788_v48 }
 0x2b5   :  { %v673_v31 = vpop.f32.mrb[4].mxu1 }
 0x2b6   :  { %v2428_v32 = vpop.f32.mrb[5].mxu1  ;;  %v677_v33 = vmul.f32 0.0078125, %v673_v31 }
 0x2b8   :  { %v752_v35 = vmul.f32 %v677_v33, %v677_v33  ;;  %v757_v43 = vrot.slane %v677_v33, %v3039_v42 }
 0x2ba   :  { %v758_v45 = vsub.f32 %v2996_v1, %v757_v43  ;;  %v759_v46 = vsub.f32 %v2994_v0, %v757_v43  ;;  %v859_v0 = vld [vmem:[%s3281_s6 + $0x10] sm:$0xff]  ;;  %v860_v1 = vld [vmem:[%s3281_s6 + $0x18] sm:$0xff] }
 0x2bb   :  { %v2716_v2 = vpack.c.bf16 %v860_v1, %v859_v0 }
 0x2c5   :  { %v747_v34 = vpop.f32.mrb[6].mxu1 }
 0x2c6   :  { %v751_v36 = vmul.f32 0.0078125, %v747_v34  ;;  %v2447_v37 = vpop.f32.mrb[7].mxu1 }
 0x2c7   :  { %v1276_v37 = vld [vmem:[%s3283_s8 + $0x8] sm:$0xff] }
 0x2c8   :  { %v753_v39 = vsub.f32 %v751_v36, %v752_v35  ;;  %v1275_v36 = vld [vmem:[%s3283_s8] sm:$0xff] }
 0x2c9   :  { %v2740_v38 = vpack.c.bf16 %v1276_v37, %v1275_v36 }
 0x2ca   :  { %v760_v40 = vadd.f32 1e-05, %v753_v39  ;;  %v1277_v39 = vld [vmem:[%s3283_s8 + $0x10] sm:$0xff] }
 0x2cc   :  { %2782 = vrsqrt.f32 %v760_v40  ;;  %v1278_v40 = vld [vmem:[%s3283_s8 + $0x18] sm:$0xff] }
 0x2cd   :  { %v2743_v41 = vpack.c.bf16 %v1278_v40, %v1277_v39 }
 0x2d6   :  { %v2783_v44 = vpop.eup %2782 }
 0x2d7   :  { %v765_v47 = vrot.slane %v2783_v44, %v3039_v42  ;;  %v2173_v44 = vld [vmem:[%s3284_s7] ss:$0 sm:$0xff] }
 0x2d9   :  { %v766_v50 = vmul.f32 %v765_v47, %v758_v45  ;;  %v767_v51 = vmul.f32 %v765_v47, %v759_v46 }
 0x2db   :  { %v773_v53 = vmul.f32 %v2147_v49, %v766_v50  ;;  %v774_v54 = vmul.f32 %v2147_v49, %v767_v51 }
 0x2dd   :  { %v780_v55 = vadd.f32 %v2148_v52, %v773_v53  ;;  %v781_v56 = vadd.f32 %v2148_v52, %v774_v54 }
 0x2df   :  { %v2695_v57 = vpack.c.bf16 %v781_v56, %v780_v55 }
 0x2e1   :  { %2696 = vmatpush3.bf16.msra.mxu0 %v2695_v57 }
 0x2e2   :  { %2697 = vmatprep.subr.bf16.mxu0 %v2788_v48 }
 0x2e4   :  { %2453 = vmatmul.mubr.msk.f32.vlgmr.msra.gmra.mrb[4].mxu0 %vm783_vm4, %v782_v59 }
 0x2e5   :  { %2699 = vmatpush3.bf16.msra.mxu0 %v2695_v57  ;;  %2459 = vmatprep.mubr.msk.f32.mxu0 %vm2789_vm2, %v2790_v58 }
 0x2e6   :  { %2712 = vmatprep.subr.bf16.mxu0 %v2788_v48 }
 0x2e8   :  { %2460 = vmatmul.mubr.msk.f32.vlgmr.msra.gmra.mrb[6].mxu0 %vm783_vm4, %v2150_v62 }
 0x2e9   :  { %2714 = vmatpush3.bf16.msra.mxu0 %v2713_v63  ;;  %2497 = vmatprep.mubr.msk.f32.mxu0 %vm2789_vm2, %v2790_v58 }
 0x2ea   :  { %2715 = vmatprep.subr.bf16.mxu0 %v2788_v48 }
 0x2ed   :  { %2717 = vmatpush3.bf16.msra.mxu0 %v2716_v2 }
 0x2ee   :  { %2718 = vmatprep.subr.bf16.mxu0 %v2788_v48 }
 0x2f1   :  { %2720 = vmatpush3.bf16.msra.mxu0 %v2719_v5 }
 0x2f2   :  { %2721 = vmatprep.subr.bf16.mxu0 %v2788_v48 }
 0x2f5   :  { %2723 = vmatpush3.bf16.msra.mxu0 %v2722_v8 }
 0x2f6   :  { %2727 = vmatprep.subr.bf16.mxu0 %v2788_v48 }
 0x3b7   :  { %v853_v15 = vpop.f32.mrb[4].mxu0 }
 0x3b8   :  { %v2454_v18 = vpop.f32.mrb[5].mxu0  ;;  %2498 = vmatmul.mubr.msk.f32.vlgmr.msra.gmra.mrb[8].mxu0 %vm575_vm3, %v853_v15  ;;  %v2176_v15 = vld [vmem:[%s3284_s7 + $0x1] ss:$0 sm:$0xff] }
 0x3b9   :  { %2729 = vmatpush3.bf16.msra.mxu0 %v2728_v14  ;;  %2523 = vmatprep.mubr.msk.f32.mxu0 %vm2789_vm2, %v2790_v58  ;;  %v2181_v18 = vld [vmem:[%s3285_s10 + $0x20] sm:$0xff] }
 0x3ba   :  { %2730 = vmatprep.subr.bf16.mxu0 %v2788_v48 }
 0x3bb   :  { %v936_v20 = vpop.f32.mrb[6].mxu0 }
 0x3bc   :  { %v2461_v21 = vpop.f32.mrb[7].mxu0  ;;  %2479 = vmatmul.mubr.msk.f32.vlgmr.msra.gmra.mrb[8].mxu1 %vm575_vm3, %v936_v20  ;;  %v2182_v20 = vld [vmem:[%s3285_s10 + $0x28] sm:$0xff] }
 0x3bd   :  { %2726 = vmatpush3.bf16.msra.mxu1 %v2695_v57  ;;  %2504 = vmatprep.mubr.msk.f32.mxu1 %vm2789_vm2, %v2790_v58  ;;  %v1528_v21 = vld [vmem:[%s3285_s10] sm:$0xff]  ;;  %v2752_v26 = vpack.c.bf16 %v2182_v20, %v2181_v18 }
 0x3be   :  { %2732 = vmatpush3.bf16.msra.mxu0 %v2731_v19  ;;  %2739 = vmatprep.subr.bf16.mxu1 %v2788_v48 }
 0x3bf   :  { %2733 = vmatprep.subr.bf16.mxu0 %v2788_v48 }
 0x3c0   :  { %2505 = vmatmul.mubr.msk.f32.vlgmr.msra.gmra.mrb[10].mxu1 %vm783_vm4, %v2162_v22  ;;  %v1529_v22 = vld [vmem:[%s3285_s10 + $0x8] sm:$0xff] }
 0x3c1   :  { %2534 = vmatprep.mubr.msk.f32.mxu1 %vm2789_vm2, %v2790_v58  ;;  %2741 = vmatpush3.bf16.msra.mxu1 %v2740_v38  ;;  %v2758_v27 = vpack.c.bf16 %v1529_v22, %v1528_v21 }
 0x3c2   :  { %2735 = vmatpush3.bf16.msra.mxu0 %v2734_v25  ;;  %2742 = vmatprep.subr.bf16.mxu1 %v2788_v48  ;;  %v1453_v25 = vld [vmem:[%s3286_s9] sm:$0xf] }
 0x3c3   :  { %2736 = vmatprep.subr.bf16.mxu0 %v2788_v48 }
 0x3c5   :  { %2744 = vmatpush3.bf16.msra.mxu1 %v2743_v41 }
 0x3c6   :  { %2738 = vmatpush3.bf16.msra.mxu0 %v2737_v28  ;;  %2745 = vmatprep.subr.bf16.mxu1 %v2788_v48  ;;  %v2183_v28 = vld [vmem:[%s3285_s10 + $0x30] sm:$0xff] }
 0x3c7   :  { %2548 = vmatprep.subr.mxu0 %v2790_v58 }
 0x48b   :  { %v1091_v29 = vpop.f32.mrb[8].mxu0 }
 0x48c   :  { %v2499_v30 = vpop.f32.mrb[9].mxu0 }
 0x48f   :  { %v1018_v31 = vpop.f32.mrb[8].mxu1 }
 0x490   :  { %v1092_v32 = vadd.f32 %v1091_v29, %v1018_v31  ;;  %v2480_v33 = vpop.f32.mrb[9].mxu1  ;;  %v2184_v29 = vld [vmem:[%s3285_s10 + $0x38] sm:$0xff]  ;;  %v1530_v31 = vld [vmem:[%s3285_s10 + $0x10] sm:$0xff] }
 0x491   :  { %v2755_v30 = vpack.c.bf16 %v2184_v29, %v2183_v28  ;;  %v2198_v28 = vld [vmem:[%s3288_s11 + $0x2] ss:$0 sm:$0xff] }
 0x493   :  { %v1166_v34 = vpop.f32.mrb[10].mxu1 }
 0x494   :  { %v2506_v35 = vpop.f32.mrb[11].mxu1  ;;  %2524 = vmatmul.mubr.msk.f32.vlgmr.msra.gmra.mrb[10].mxu0 %vm575_vm3, %v1166_v34  ;;  %v2189_v34 = vld [vmem:[%s3285_s10 + $0x40] sm:$0xff] }
 0x495   :  { %2550 = vmatprep.mubr.msk.f32.mxu0 %vm2789_vm2, %v2790_v58  ;;  %v2190_v35 = vld [vmem:[%s3285_s10 + $0x48] sm:$0xff] }
 0x496   :  { %v2764_v36 = vpack.c.bf16 %v2190_v35, %v2189_v34 }
 0x567   :  { %v1248_v43 = vpop.f32.mrb[10].mxu0 }
 0x568   :  { %v1252_v45 = vadd.f32 %v1248_v43, %v1092_v32  ;;  %v2525_v46 = vpop.f32.mrb[11].mxu0  ;;  %v1531_v32 = vld [vmem:[%s3285_s10 + $0x18] sm:$0xff]  ;;  %v2191_v43 = vld [vmem:[%s3285_s10 + $0x50] sm:$0xff] }
 0x569   :  { %v2761_v33 = vpack.c.bf16 %v1531_v32, %v1530_v31 }
 0x56a   :  { %v1258_v47 = vadd.f32 %v2173_v44, %v1252_v45  ;;  %v2192_v44 = vld [vmem:[%s3285_s10 + $0x58] sm:$0xff] }
 0x56b   :  { %v2767_v45 = vpack.c.bf16 %v2192_v44, %v2191_v43 }
 0x56c   :  { %v1259_v49 = vmax.f32 %v1258_v47, 0.0 }
 0x56e   :  { %v1260_v50 = vsel %vm50_vm0, %v1259_v49, 0.0  ;;  %v1267_v51 = vmul.f32 %v1259_v49, %v1259_v49 }
 0x56f   :  { %v1261_v52 = vrot.slane %v1260_v50, 4 }
 0x570   :  { %v1268_v53 = vsel %vm50_vm0, %v1267_v51, 0.0 }
 0x571   :  { %v1262_v54 = vadd.f32 %v1261_v52, %v1260_v50  ;;  %v1269_v55 = vrot.slane %v1268_v53, 4 }
 0x573   :  { %v1263_v56 = vrot.slane %v1262_v54, 2  ;;  %v1270_v57 = vadd.f32 %v1269_v55, %v1268_v53  ;;  %v1936_v55 = vld [vmem:[%s3287_s12 + $0x8] sm:$0xff] }
 0x575   :  { %v1264_v59 = vadd.f32 %v1263_v56, %v1262_v54  ;;  %v1271_v60 = vrot.slane %v1270_v57, 2  ;;  %v1935_v54 = vld [vmem:[%s3287_s12] sm:$0xff] }
 0x576   :  { %v2770_v56 = vpack.c.bf16 %v1936_v55, %v1935_v54 }
 0x577   :  { %v1265_v61 = vrot.slane %v1264_v59, 1  ;;  %v1272_v62 = vadd.f32 %v1271_v60, %v1270_v57 }
 0x579   :  { %v1266_v63 = vadd.f32 %v1265_v61, %v1264_v59  ;;  %v1273_v0 = vrot.slane %v1272_v62, 1  ;;  %v2194_v59 = vld [vmem:[%s3288_s11] ss:$0 sm:$0xff] }
 0x57b   :  { %2535 = vmatmul.mubr.msk.f32.vlgmr.msra.gmra.mrb[12].mxu1 %vm50_vm0, %v1266_v63  ;;  %v1274_v1 = vadd.f32 %v1273_v0, %v1272_v62 }
 0x57c   :  { %2747 = vmatpush3.bf16.msra.mxu1 %v2740_v38  ;;  %2545 = vmatprep.mubr.msk.f32.mxu1 %vm2789_vm2, %v2790_v58 }
 0x57d   :  { %2748 = vmatprep.subr.bf16.mxu1 %v2788_v48 }
 0x580   :  { %2750 = vmatpush3.bf16.msra.mxu1 %v2743_v41  ;;  %v2187_v41 = vld [vmem:[%s3286_s9 + $0x8] sm:$0xf] }
 0x581   :  { %2553 = vmatprep.subr.mxu1 %v2790_v58 }
 0x583   :  { %2546 = vmatmul.mubr.msk.f32.vlgmr.msra.gmra.mrb[14].mxu1 %vm50_vm0, %v1274_v1 }
 0x584   :  { %2555 = vmatprep.mubr.msk.f32.mxu1 %vm2789_vm2, %v2790_v58 }
 0x64e   :  { %v1348_v2 = vpop.f32.mrb[12].mxu1 }
 0x64f   :  { %v2536_v3 = vpop.f32.mrb[13].mxu1  ;;  %v1352_v4 = vmul.f32 0.03125, %v1348_v2 }
 0x651   :  { %v1427_v6 = vmul.f32 %v1352_v4, %v1352_v4  ;;  %v1432_v11 = vrot.slane %v1352_v4, %v3039_v42 }
 0x653   :  { %v1433_v13 = vsub.f32 %v1259_v49, %v1432_v11 }
 0x656   :  { %v1422_v5 = vpop.f32.mrb[14].mxu1 }
 0x657   :  { %v1426_v7 = vmul.f32 0.03125, %v1422_v5  ;;  %v2547_v8 = vpop.f32.mrb[15].mxu1 }
 0x659   :  { %v1428_v9 = vsub.f32 %v1426_v7, %v1427_v6 }
 0x65b   :  { %v1434_v10 = vadd.f32 1e-05, %v1428_v9 }
 0x65d   :  { %2784 = vrsqrt.f32 %v1434_v10 }
 0x667   :  { %v2785_v12 = vpop.eup %2784 }
 0x668   :  { %v1439_v14 = vrot.slane %v2785_v12, %v3039_v42 }
 0x66a   :  { %v1440_v16 = vmul.f32 %v1439_v14, %v1433_v13 }
 0x66c   :  { %v1446_v19 = vmul.f32 %v2176_v15, %v1440_v16 }
 0x66e   :  { %v1452_v23 = vadd.f32 %v2177_v17, %v1446_v19 }
 0x670   :  { %2549 = vmatpush3.msra.mxu0 %v1452_v23  ;;  %2554 = vmatpush3.msra.mxu1 %v1452_v23 }
 0x671   :  { %2556 = vmatmul.mubr.msk.f32.vlgmr.msra.gmra.mrb[16].mxu1 %vm1454_vm5, %v2179_v24  ;;  %2551 = vmatmul.mubr.msk.f32.vlgmr.msra.gmra.mrb[12].mxu0 %vm1454_vm5, %v1453_v25 }
 0x672   :  { %2751 = vmatprep.subr.bf16.mxu0 %v2788_v48  ;;  %2757 = vmatprep.subr.bf16.mxu1 %v2788_v48 }
 0x673   :  { %2753 = vmatpush3.bf16.msra.mxu0 %v2752_v26  ;;  %2759 = vmatpush3.bf16.msra.mxu1 %v2758_v27 }
 0x674   :  { %2754 = vmatprep.subr.bf16.mxu0 %v2788_v48  ;;  %2566 = vmatprep.mubr.msk.f32.mxu0 %vm2789_vm2, %v2790_v58 }
 0x675   :  { %2760 = vmatprep.subr.bf16.mxu1 %v2788_v48  ;;  %2577 = vmatprep.mubr.msk.f32.mxu1 %vm2789_vm2, %v2790_v58 }
 0x677   :  { %2756 = vmatpush3.bf16.msra.mxu0 %v2755_v30  ;;  %2762 = vmatpush3.bf16.msra.mxu1 %v2761_v33 }
 0x678   :  { %2580 = vmatprep.subr.mxu0 %v2790_v58  ;;  %2763 = vmatprep.subr.bf16.mxu1 %v2788_v48 }
 0x744   :  { %v1603_v37 = vpop.f32.mrb[16].mxu1  ;;  %v1524_v38 = vpop.f32.mrb[12].mxu0 }
 0x745   :  { %2567 = vmatmul.mubr.msk.f32.vlgmr.msra.gmra.mrb[14].mxu0 %vm50_vm0, %v1603_v37  ;;  %v2557_v39 = vpop.f32.mrb[17].mxu1  ;;  %2578 = vmatmul.mubr.msk.f32.vlgmr.msra.gmra.mrb[18].mxu1 %vm50_vm0, %v1524_v38  ;;  %v2552_v40 = vpop.f32.mrb[13].mxu0 }
 0x746   :  { %2581 = vmatpush3.msra.mxu0 %v1452_v23  ;;  %2582 = vmatprep.mubr.msk.f32.mxu0 %vm2789_vm2, %v2790_v58 }
 0x747   :  { %2765 = vmatpush3.bf16.msra.mxu1 %v2764_v36  ;;  %2593 = vmatprep.mubr.msk.f32.mxu1 %vm2789_vm2, %v2790_v58 }
 0x748   :  { %2766 = vmatprep.subr.bf16.mxu1 %v2788_v48  ;;  %2769 = vmatprep.subr.bf16.mxu0 %v2788_v48 }
 0x749   :  { %2583 = vmatmul.mubr.msk.f32.vlgmr.msra.gmra.mrb[16].mxu0 %vm1454_vm5, %v2187_v41 }
 0x74a   :  { %2600 = vmatprep.mubr.msk.f32.mxu0 %vm2789_vm2, %v2790_v58  ;;  %2771 = vmatpush3.bf16.msra.mxu0 %v2770_v56 }
 0x74b   :  { %2768 = vmatpush3.bf16.msra.mxu1 %v2767_v45  ;;  %2772 = vmatprep.subr.bf16.mxu0 %v2788_v48 }
 0x818   :  { %v1681_v46 = vpop.f32.mrb[14].mxu0  ;;  %v1754_v47 = vpop.f32.mrb[18].mxu1 }
 0x819   :  { %v2568_v49 = vpop.f32.mrb[15].mxu0  ;;  %v1755_v50 = vadd.f32 %v1754_v47, %v1681_v46  ;;  %v2579_v51 = vpop.f32.mrb[19].mxu1 }
 0x81c   :  { %v1829_v52 = vpop.f32.mrb[16].mxu0 }
 0x81d   :  { %2594 = vmatmul.mubr.msk.f32.vlgmr.msra.gmra.mrb[20].mxu1 %vm50_vm0, %v1829_v52  ;;  %v2584_v53 = vpop.f32.mrb[17].mxu0 }
 0x8f0   :  { %v1907_v57 = vpop.f32.mrb[20].mxu1 }
 0x8f1   :  { %v1911_v60 = vadd.f32 %v1907_v57, %v1755_v50  ;;  %v2595_v61 = vpop.f32.mrb[21].mxu1 }
 0x8f3   :  { %v1917_v62 = vadd.f32 %v2194_v59, %v1911_v60 }
 0x8f5   :  { %v1918_v63 = vmax.f32 %v1917_v62, 0.0 }
 0x8f7   :  { %v1920_v0 = vsel %vm1919_vm6, %v1918_v63, 0.0  ;;  %v1927_v1 = vmul.f32 %v1918_v63, %v1918_v63 }
 0x8f8   :  { %v1921_v2 = vrot.slane %v1920_v0, 4 }
 0x8f9   :  { %v1928_v3 = vsel %vm1919_vm6, %v1927_v1, 0.0 }
 0x8fa   :  { %v1922_v4 = vadd.f32 %v1921_v2, %v1920_v0  ;;  %v1929_v5 = vrot.slane %v1928_v3, 4 }
 0x8fc   :  { %v1923_v6 = vrot.slane %v1922_v4, 2  ;;  %v1930_v48 = vadd.f32 %v1929_v5, %v1928_v3 }
 0x8fe   :  { %v1924_v7 = vadd.f32 %v1923_v6, %v1922_v4  ;;  %v1931_v8 = vrot.slane %v1930_v48, 2 }
 0x900   :  { %v1925_v9 = vrot.slane %v1924_v7, 1  ;;  %v1932_v10 = vadd.f32 %v1931_v8, %v1930_v48 }
 0x902   :  { %v1926_v11 = vadd.f32 %v1925_v9, %v1924_v7  ;;  %v1933_v12 = vrot.slane %v1932_v10, 1 }
 0x904   :  { %2601 = vmatmul.mubr.msk.f32.vlgmr.msra.gmra.mrb[18].mxu0 %vm783_vm4, %v1926_v11  ;;  %v1934_v13 = vadd.f32 %v1933_v12, %v1932_v10 }
 0x905   :  { %2774 = vmatpush3.bf16.msra.mxu0 %v2770_v56  ;;  %2607 = vmatprep.mubr.msk.f32.mxu0 %vm2789_vm2, %v2790_v58  ;;  %v2197_v58 = vld [vmem:[%s3288_s11 + $0x1] ss:$0 sm:$0xff] }
 0x908   :  { %2608 = vmatmul.mubr.msk.f32.vlgmr.msra.gmra.mrb[20].mxu0 %vm783_vm4, %v1934_v13 }
 0x9d7   :  { %v2006_v14 = vpop.f32.mrb[18].mxu0 }
 0x9d8   :  { %v2010_v15 = vmul.f32 0.125, %v2006_v14  ;;  %v2602_v16 = vpop.f32.mrb[19].mxu0 }
 0x9da   :  { %v2085_v18 = vmul.f32 %v2010_v15, %v2010_v15  ;;  %v2090_v23 = vrot.slane %v2010_v15, %v3039_v42 }
 0x9db   :  { %v2080_v17 = vpop.f32.mrb[20].mxu0 }
 0x9dc   :  { %v2084_v19 = vmul.f32 0.125, %v2080_v17  ;;  %v2609_v20 = vpop.f32.mrb[21].mxu0  ;;  %v2091_v25 = vsub.f32 %v1918_v63, %v2090_v23 }
 0x9de   :  { %v2086_v21 = vsub.f32 %v2084_v19, %v2085_v18 }
 0x9e0   :  { %v2092_v22 = vadd.f32 1e-05, %v2086_v21 }
 0x9e2   :  { %2786 = vrsqrt.f32 %v2092_v22 }
 0x9ec   :  { %v2787_v24 = vpop.eup %2786 }
 0x9ed   :  { %v2097_v26 = vrot.slane %v2787_v24, %v3039_v42 }
 0x9ef   :  { %v2098_v27 = vmul.f32 %v2097_v26, %v2091_v25 }
 0x9f1   :  { %v2104_v29 = vmul.f32 %v2197_v58, %v2098_v27 }
 0x9f3   :  { %v2110_v30 = vadd.f32 %v2198_v28, %v2104_v29 }
 0x9f5   :  { %2111 = vst.msk [vmem:[%s3289_s13] sm:$0xf] %vm1919_vm6, %v2110_v30 }

</bundles_post_ra>
